<compile_context>
chip_gen: v6e
topology: v6e:2x2x1
jax: 0.10.0
libtpu: 0.0.40
codegen_flags: <defaults>
</compile_context>

<pallas_src>
import functools

import jax
import jax.numpy as jnp
from jax import lax
from jax.experimental import pallas as pl
from jax.experimental.pallas import tpu as pltpu

EPS = 1e-5  # PyTorch nn.LayerNorm default eps
VMEM_LIMIT = 64 * 1024 * 1024  # raise scoped VMEM (v5e default is 16 MiB)


# ----------------------------- small helpers ----------------------------------

def _round_up(n, m):
    return ((n + m - 1) // m) * m


def _pad_tokens(n):
    # lane-dense (128) for big sequences, sublane-dense (8) otherwise.
    return _round_up(n, 128) if n >= 128 else _round_up(n, 8)


def _row_tile(m):
    # m is padded to a multiple of 8 by the caller, so 8 always divides.
    for t in (2048, 1024, 512, 256, 128, 64, 32, 16, 8):
        if m % t == 0:
            return t
    return 8


def _bf16(x):
    return x.astype(jnp.bfloat16)


# ----------------------------- in-kernel helpers -------------------------------

def _layernorm(x, g, b):
    mu = jnp.mean(x, axis=-1, keepdims=True)
    var = jnp.mean(jnp.square(x - mu), axis=-1, keepdims=True)
    return (x - mu) * lax.rsqrt(var + EPS) * g + b


def _gelu_tanh(x):
    # tanh-form GELU: runs on the EUP instead of a long VALU erf polynomial.
    c = 0.7978845608028654  # sqrt(2/pi)
    return 0.5 * x * (1.0 + jnp.tanh(c * (x + 0.044715 * x * x * x)))


# --------------------------------- kernels -------------------------------------

def _patch_embed_kernel(x_ref, g1_ref, b1_ref, w_ref, bw_ref, g2_ref, b2_ref, o_ref):
    # LayerNorm(patch_dim) -> Linear(patch_dim, dim) -> LayerNorm(dim), row tile.
    x = x_ref[...]                                            # (tm, patch_dim) f32
    y = _layernorm(x, g1_ref[...], b1_ref[...])
    z = jnp.dot(_bf16(y), w_ref[...], preferred_element_type=jnp.float32) + bw_ref[...]
    o_ref[...] = _layernorm(z, g2_ref[...], b2_ref[...])


def _layer_kernel(x_ref, aln_g, aln_b, wqkv_ref, wo_ref, bo_ref,
                  fln_g, fln_b, w1_ref, b1_ref, w2_ref, b2_ref, o_ref,
                  *, heads, dim_head, n_real):
    # Fused transformer layer: pre-LN MHSA + residual, then pre-LN MLP + residual.
    # Softmax scale is already folded into the Q third of wqkv.
    x = x_ref[0]                                              # (Np, D) f32
    n_pad = x.shape[0]
    inner = heads * dim_head

    # ---------------- attention ----------------
    xn = _layernorm(x, aln_g[...], aln_b[...])
    qkv = jnp.dot(_bf16(xn), wqkv_ref[...],
                  preferred_element_type=jnp.float32)         # (Np, 3*inner)
    qkv = _bf16(qkv)                                          # single cast, halves footprint

    # heads-batched views (heads, Np, dim_head)
    q = jnp.transpose(qkv[:, :inner].reshape(n_pad, heads, dim_head), (1, 0, 2))
    k = jnp.transpose(qkv[:, inner:2 * inner].reshape(n_pad, heads, dim_head), (1, 0, 2))
    v = jnp.transpose(qkv[:, 2 * inner:].reshape(n_pad, heads, dim_head), (1, 0, 2))

    # Q @ K^T batched over heads: back-to-back MXU matmuls, no per-head drain.
    s = lax.dot_general(q, k, (((2,), (2,)), ((0,), (0,))),
                        preferred_element_type=jnp.float32)   # (heads, Np, Np)
    if n_real < n_pad:                                        # mask padded key columns
        key_pos = lax.broadcasted_iota(jnp.int32, (1, 1, n_pad), 2)
        s = jnp.where(key_pos < n_real, s, -1e30)
    s = s - jnp.max(s, axis=-1, keepdims=True)
    e = jnp.exp(s)
    p = e * pl.reciprocal(jnp.sum(e, axis=-1, keepdims=True), approx=True)

    ctx = lax.dot_general(_bf16(p), v, (((2,), (1,)), ((0,), (0,))),
                          preferred_element_type=jnp.float32)  # (heads, Np, dh)
    ctx = jnp.transpose(ctx, (1, 0, 2)).reshape(n_pad, inner)  # (Np, inner)

    proj = jnp.dot(_bf16(ctx), wo_ref[...],
                   preferred_element_type=jnp.float32) + bo_ref[...]
    x = proj + x                                              # residual

    # ---------------- feed-forward ----------------
    yn = _layernorm(x, fln_g[...], fln_b[...])
    h1 = jnp.dot(_bf16(yn), w1_ref[...],
                 preferred_element_type=jnp.float32) + b1_ref[...]
    h1 = _gelu_tanh(h1)
    y = jnp.dot(_bf16(h1), w2_ref[...],
                preferred_element_type=jnp.float32) + b2_ref[...]
    o_ref[0] = y + x                                          # residual


def _head_kernel(x_ref, g_ref, b_ref, w_ref, bias_ref, o_ref):
    # Final LayerNorm -> mean over the supplied token rows -> Linear head.
    # For pool='cls' the wrapper passes only the CLS row, so mean == identity.
    xn = _layernorm(x_ref[...], g_ref[...], b_ref[...])       # (B, Nh, D)
    pooled = jnp.mean(xn, axis=1)                             # (B, D)
    o_ref[...] = jnp.dot(_bf16(pooled), w_ref[...],
                         preferred_element_type=jnp.float32) + bias_ref[...]


# ------------------------------ pallas wrappers ---------------------------------

def _const_spec(shape):
    # Constant-index weight block; single buffer (double-buffering a constant
    # index_map only wastes VMEM -- critical on v7x's 64 MiB).
    return pl.BlockSpec(shape, lambda *_: tuple(0 for _ in shape),
                        pipeline_mode=pl.Buffered(buffer_count=1))


def patch_embed(x2d, ln1_g, ln1_b, w, b, ln2_g, ln2_b):
    M, PD = x2d.shape
    dim = w.shape[1]
    tm = _row_tile(M)
    return pl.pallas_call(
        _patch_embed_kernel,
        out_shape=jax.ShapeDtypeStruct((M, dim), jnp.float32),
        grid=(M // tm,),
        in_specs=[
            pl.BlockSpec((tm, PD), lambda i: (i, 0)),
            pl.BlockSpec((1, PD), lambda i: (0, 0)),
            pl.BlockSpec((1, PD), lambda i: (0, 0)),
            _const_spec((PD, dim)),
            pl.BlockSpec((1, dim), lambda i: (0, 0)),
            pl.BlockSpec((1, dim), lambda i: (0, 0)),
            pl.BlockSpec((1, dim), lambda i: (0, 0)),
        ],
        out_specs=pl.BlockSpec((tm, dim), lambda i: (i, 0)),
        compiler_params=pltpu.CompilerParams(
            dimension_semantics=("parallel",), vmem_limit_bytes=VMEM_LIMIT),
    )(x2d, ln1_g, ln1_b, w, b, ln2_g, ln2_b)


def transformer_layer(x, aln_g, aln_b, wqkv, wo, bo, fln_g, fln_b, w1, b1, w2, b2,
                      *, heads, dim_head, n_real):
    B, Np, D = x.shape
    inner = heads * dim_head
    Hm = w1.shape[1]
    kern = functools.partial(_layer_kernel, heads=heads, dim_head=dim_head,
                             n_real=n_real)

    def row(d):
        return pl.BlockSpec((1, d), lambda b: (0, 0))

    # TODO(synk): for very large N / mlp_dim on v7x (64 MiB VMEM) tile the query
    # dimension (flash-style) instead of holding the full fused layer resident.
    return pl.pallas_call(
        kern,
        out_shape=jax.ShapeDtypeStruct((B, Np, D), jnp.float32),
        grid=(B,),
        in_specs=[
            pl.BlockSpec((1, Np, D), lambda b: (b, 0, 0)),
            row(D), row(D), _const_spec((D, 3 * inner)), _const_spec((inner, D)), row(D),
            row(D), row(D), _const_spec((D, Hm)), row(Hm), _const_spec((Hm, D)), row(D),
        ],
        out_specs=pl.BlockSpec((1, Np, D), lambda b: (b, 0, 0)),
        compiler_params=pltpu.CompilerParams(
            dimension_semantics=("parallel",), vmem_limit_bytes=VMEM_LIMIT),
    )(x, aln_g, aln_b, wqkv, wo, bo, fln_g, fln_b, w1, b1, w2, b2)


def head_block(x, g, b, w, bias):
    B, Nh, D = x.shape
    Cp = w.shape[1]
    return pl.pallas_call(
        _head_kernel,
        out_shape=jax.ShapeDtypeStruct((B, Cp), jnp.float32),
        grid=(1,),
        in_specs=[
            pl.BlockSpec((B, Nh, D), lambda i: (0, 0, 0)),
            pl.BlockSpec((1, D), lambda i: (0, 0)),
            pl.BlockSpec((1, D), lambda i: (0, 0)),
            pl.BlockSpec((D, Cp), lambda i: (0, 0)),
            pl.BlockSpec((1, Cp), lambda i: (0, 0)),
        ],
        out_specs=pl.BlockSpec((B, Cp), lambda i: (0, 0)),
    )(x, g, b, w, bias)


# --------------------------- param preparation (once) ---------------------------

def prepare_params(params, *, dim_head):
    """Build kernel-ready params ONCE: bf16 weights, lane-dense (1,D) vectors,
    softmax scale folded into Q weights, classifier head padded to 128 lanes."""
    scale = dim_head ** -0.5

    def row(v):
        return v.reshape(1, -1).astype(jnp.float32)

    dim = params['patch']['w'].shape[1]
    num_classes = params['head_w'].shape[1]
    c_pad = max(128, _round_up(num_classes, 128))

    pe = params['patch']
    kp = {
        'num_classes': num_classes,
        'patch': {
            'ln1_g': row(pe['ln1_g']), 'ln1_b': row(pe['ln1_b']),
            'w': pe['w'].astype(jnp.bfloat16), 'b': row(pe['b']),
            'ln2_g': row(pe['ln2_g']), 'ln2_b': row(pe['ln2_b']),
        },
        'pos_embedding': params['pos_embedding'].astype(jnp.float32),
        'cls_token': params['cls_token'].astype(jnp.float32),
        'layers': [],
        'final_ln_g': row(params['final_ln_g']),
        'final_ln_b': row(params['final_ln_b']),
        'head_w': jnp.zeros((dim, c_pad), jnp.float32)
                    .at[:, :num_classes].set(params['head_w']).astype(jnp.bfloat16),
        'head_b': jnp.zeros((1, c_pad), jnp.float32)
                    .at[:, :num_classes].set(params['head_b']),
    }
    for layer in params['layers']:
        a, f = layer['attn'], layer['ff']
        inner = a['wo'].shape[0]
        wqkv = a['wqkv'].astype(jnp.float32).at[:, :inner].multiply(scale)  # fold scale into Q
        kp['layers'].append({
            'attn': {
                'ln_g': row(a['ln_g']), 'ln_b': row(a['ln_b']),
                'wqkv': wqkv.astype(jnp.bfloat16),
                'wo': a['wo'].astype(jnp.bfloat16),
                'bo': row(a['bo']),
            },
            'ff': {
                'ln_g': row(f['ln_g']), 'ln_b': row(f['ln_b']),
                'w1': f['w1'].astype(jnp.bfloat16), 'b1': row(f['b1']),
                'w2': f['w2'].astype(jnp.bfloat16), 'b2': row(f['b2']),
            },
        })
    return kp


# --------------------------------- ViT forward ----------------------------------

def vit_forward(img, kp, *, patch_size, heads, dim_head, pool='cls'):
    B, C, H, W = img.shape
    p = patch_size
    Hp, Wp = H // p, W // p
    # Rearrange('b c (h p1) (w p2) -> b (h w) (p1 p2 c)')
    x = img.reshape(B, C, Hp, p, Wp, p).transpose(0, 2, 4, 3, 5, 1).reshape(B, Hp * Wp, p * p * C)
    N = Hp * Wp
    patch_dim = p * p * C
    dim = kp['patch']['w'].shape[1]

    # ---- patch embedding (row-tiled over B*N, rows padded to a multiple of 8) ----
    M = B * N
    Mp = _round_up(M, 8)
    x2d = x.reshape(M, patch_dim)
    if Mp != M:
        x2d = jnp.pad(x2d, ((0, Mp - M), (0, 0)))
    pe = kp['patch']
    emb = patch_embed(x2d, pe['ln1_g'], pe['ln1_b'], pe['w'], pe['b'],
                      pe['ln2_g'], pe['ln2_b'])[:M].reshape(B, N, dim)

    cls = jnp.broadcast_to(kp['cls_token'], (B, 1, dim))
    t = jnp.concatenate([cls, emb], axis=1) + kp['pos_embedding'][:, : N + 1]
    # TODO(synk): dropout / emb_dropout are p=0.0 (identity at inference) -> omitted.

    # ---- pad tokens to a sublane/lane-friendly count; padded keys masked in-kernel ----
    n_tok = N + 1
    n_pad = _pad_tokens(n_tok)
    if n_pad != n_tok:
        t = jnp.pad(t, ((0, 0), (0, n_pad - n_tok), (0, 0)))

    for layer in kp['layers']:
        a, f = layer['attn'], layer['ff']
        t = transformer_layer(
            t,
            a['ln_g'], a['ln_b'], a['wqkv'], a['wo'], a['bo'],
            f['ln_g'], f['ln_b'], f['w1'], f['b1'], f['w2'], f['b2'],
            heads=heads, dim_head=dim_head, n_real=n_tok)

    t = t[:, :n_tok]
    # pool='cls': only the CLS row reaches the head kernel (no wasted DMA / LN).
    t_head = t[:, :1] if pool == 'cls' else t
    logits = head_block(t_head, kp['final_ln_g'], kp['final_ln_b'],
                        kp['head_w'], kp['head_b'])
    return logits[:, :kp['num_classes']]


# ------------------------------ pure-JAX reference -------------------------------

def _ref_ln(x, g, b):
    mu = x.mean(-1, keepdims=True)
    var = ((x - mu) ** 2).mean(-1, keepdims=True)
    return (x - mu) / jnp.sqrt(var + EPS) * g + b


def vit_reference(img, params, *, patch_size, heads, dim_head, pool='cls'):
    B, C, H, W = img.shape
    p = patch_size
    Hp, Wp = H // p, W // p
    x = img.reshape(B, C, Hp, p, Wp, p).transpose(0, 2, 4, 3, 5, 1).reshape(B, Hp * Wp, p * p * C)
    pe = params['patch']
    x = _ref_ln(x, pe['ln1_g'], pe['ln1_b']) @ pe['w'] + pe['b']
    x = _ref_ln(x, pe['ln2_g'], pe['ln2_b'])
    N, dim = x.shape[1], x.shape[2]
    cls = jnp.broadcast_to(params['cls_token'], (B, 1, dim))
    x = jnp.concatenate([cls, x], axis=1) + params['pos_embedding'][:, : N + 1]
    inner = heads * dim_head
    scale = dim_head ** -0.5
    for layer in params['layers']:
        a = layer['attn']
        xn = _ref_ln(x, a['ln_g'], a['ln_b'])
        qkv = xn @ a['wqkv']
        q, k, v = jnp.split(qkv, 3, axis=-1)
        sh = lambda t: t.reshape(B, -1, heads, dim_head).transpose(0, 2, 1, 3)
        q, k, v = sh(q), sh(k), sh(v)
        dots = jnp.einsum('bhnd,bhmd->bhnm', q, k) * scale
        attn = jax.nn.softmax(dots, axis=-1)
        o = jnp.einsum('bhnm,bhmd->bhnd', attn, v).transpose(0, 2, 1, 3).reshape(B, -1, inner)
        x = o @ a['wo'] + a['bo'] + x
        f = layer['ff']
        h = _ref_ln(x, f['ln_g'], f['ln_b']) @ f['w1'] + f['b1']
        h = 0.5 * h * (1.0 + jax.scipy.special.erf(h / jnp.sqrt(2.0)))
        x = h @ f['w2'] + f['b2'] + x
    x = _ref_ln(x, params['final_ln_g'], params['final_ln_b'])
    pooled = x.mean(axis=1) if pool == 'mean' else x[:, 0]
    return pooled @ params['head_w'] + params['head_b']


# --------------------------------- param init ------------------------------------

def init_params(key, *, image_size, patch_size, channels, dim, depth, heads,
                dim_head, mlp_dim, num_classes):
    num_patches = (image_size // patch_size) ** 2
    patch_dim = channels * patch_size * patch_size
    inner = heads * dim_head
    keys = jax.random.split(key, 4 + depth)

    def nrm(k, shape, scale=0.02):
        return (scale * jax.random.normal(k, shape)).astype(jnp.float32)

    params = {
        'patch': {
            'ln1_g': jnp.ones((patch_dim,), jnp.float32),
            'ln1_b': jnp.zeros((patch_dim,), jnp.float32),
            'w': nrm(keys[0], (patch_dim, dim)),
            'b': jnp.zeros((dim,), jnp.float32),
            'ln2_g': jnp.ones((dim,), jnp.float32),
            'ln2_b': jnp.zeros((dim,), jnp.float32),
        },
        'pos_embedding': nrm(keys[1], (1, num_patches + 1, dim), scale=1.0),
        'cls_token': nrm(keys[2], (1, 1, dim), scale=1.0),
        'layers': [],
        'final_ln_g': jnp.ones((dim,), jnp.float32),
        'final_ln_b': jnp.zeros((dim,), jnp.float32),
        'head_w': nrm(keys[3], (dim, num_classes)),
        'head_b': jnp.zeros((num_classes,), jnp.float32),
    }
    for l in range(depth):
        lk = jax.random.split(keys[4 + l], 4)
        params['layers'].append({
            'attn': {
                'ln_g': jnp.ones((dim,), jnp.float32),
                'ln_b': jnp.zeros((dim,), jnp.float32),
                'wqkv': nrm(lk[0], (dim, 3 * inner)),
                'wo': nrm(lk[1], (inner, dim)),   # project_out=True for this config
                'bo': jnp.zeros((dim,), jnp.float32),
            },
            'ff': {
                'ln_g': jnp.ones((dim,), jnp.float32),
                'ln_b': jnp.zeros((dim,), jnp.float32),
                'w1': nrm(lk[2], (dim, mlp_dim)),
                'b1': jnp.zeros((mlp_dim,), jnp.float32),
                'w2': nrm(lk[3], (mlp_dim, dim)),
                'b2': jnp.zeros((dim,), jnp.float32),
            },
        })
    return params


if __name__ == "__main__":
    image_size, patch_size, channels = 16, 4, 3
    dim, depth, heads, dim_head = 32, 2, 4, 8
    mlp_dim, num_classes = 64, 10

    key = jax.random.PRNGKey(0)
    pkey, xkey = jax.random.split(key)
    params = init_params(pkey, image_size=image_size, patch_size=patch_size,
                         channels=channels, dim=dim, depth=depth, heads=heads,
                         dim_head=dim_head, mlp_dim=mlp_dim, num_classes=num_classes)
    kparams = prepare_params(params, dim_head=dim_head)   # bf16 / padded weights, once

    img = jax.random.normal(xkey, (2, channels, image_size, image_size), jnp.float32)

    out = vit_forward(img, kparams, patch_size=patch_size, heads=heads,
                      dim_head=dim_head, pool='cls')
    out = jax.block_until_ready(out)

    ref = vit_reference(img, params, patch_size=patch_size, heads=heads,
                        dim_head=dim_head, pool='cls')
    assert out.shape == (2, num_classes)
    err = float(jnp.max(jnp.abs(out - ref)))
    if err > 5e-2:
        raise AssertionError(f"mismatch vs pure-JAX reference: max abs err = {err}")
    print("KERNEL_OK")
</pallas_src>

<mosaic_0001>
module attributes {stable_mosaic.version = 11 : i64} {
  func.func @_patch_embed_kernel(%arg0: i32, %arg1: memref<32x48xf32, #tpu.memory_space<vmem>>, %arg2: memref<1x48xf32, #tpu.memory_space<vmem>>, %arg3: memref<1x48xf32, #tpu.memory_space<vmem>>, %arg4: memref<48x32xbf16, #tpu.memory_space<vmem>>, %arg5: memref<1x32xf32, #tpu.memory_space<vmem>>, %arg6: memref<1x32xf32, #tpu.memory_space<vmem>>, %arg7: memref<1x32xf32, #tpu.memory_space<vmem>>, %arg8: memref<32x32xf32, #tpu.memory_space<vmem>>) attributes {dimension_semantics = [#tpu.dimension_semantics<parallel>], iteration_bounds = array<i64: 1>, scalar_prefetch = 0 : i64, scratch_operands = 0 : i64, tpu.core_type = #tpu.core_type<tc>, window_params = [{transform_indices = @transform_0, window_bounds = array<i64: 32, 48>}, {pipeline_mode = #tpu.pipeline_mode<synchronous>, transform_indices = @transform_1, window_bounds = array<i64: 1, 48>}, {pipeline_mode = #tpu.pipeline_mode<synchronous>, transform_indices = @transform_2, window_bounds = array<i64: 1, 48>}, {pipeline_mode = #tpu.pipeline_mode<synchronous>, transform_indices = @transform_3, window_bounds = array<i64: 48, 32>}, {pipeline_mode = #tpu.pipeline_mode<synchronous>, transform_indices = @transform_4, window_bounds = array<i64: 1, 32>}, {pipeline_mode = #tpu.pipeline_mode<synchronous>, transform_indices = @transform_5, window_bounds = array<i64: 1, 32>}, {pipeline_mode = #tpu.pipeline_mode<synchronous>, transform_indices = @transform_6, window_bounds = array<i64: 1, 32>}, {transform_indices = @transform_7, window_bounds = array<i64: 32, 32>}]} {
    %c0 = arith.constant 0 : index
    %c0_0 = arith.constant 0 : index
    %0 = vector.load %arg1[%c0, %c0_0] : memref<32x48xf32, #tpu.memory_space<vmem>>, vector<32x48xf32>
    %c0_1 = arith.constant 0 : index
    %c0_2 = arith.constant 0 : index
    %1 = vector.load %arg2[%c0_1, %c0_2] : memref<1x48xf32, #tpu.memory_space<vmem>>, vector<1x48xf32>
    %c0_3 = arith.constant 0 : index
    %c0_4 = arith.constant 0 : index
    %2 = vector.load %arg3[%c0_3, %c0_4] : memref<1x48xf32, #tpu.memory_space<vmem>>, vector<1x48xf32>
    %cst = arith.constant dense<0.000000e+00> : vector<32xf32>
    %3 = vector.multi_reduction <add>, %0, %cst [1] : vector<32x48xf32> to vector<32xf32>
    %4 = vector.shape_cast %3 : vector<32xf32> to vector<32x1xf32>
    %cst_5 = arith.constant 4.800000e+01 : f32
    %5 = vector.broadcast %cst_5 : f32 to vector<32x1xf32>
    %6 = arith.divf %4, %5 : vector<32x1xf32>
    %7 = vector.broadcast %6 : vector<32x1xf32> to vector<32x48xf32>
    %8 = arith.subf %0, %7 : vector<32x48xf32>
    %9 = arith.mulf %8, %8 : vector<32x48xf32>
    %cst_6 = arith.constant dense<0.000000e+00> : vector<32xf32>
    %10 = vector.multi_reduction <add>, %9, %cst_6 [1] : vector<32x48xf32> to vector<32xf32>
    %11 = vector.shape_cast %10 : vector<32xf32> to vector<32x1xf32>
    %cst_7 = arith.constant 4.800000e+01 : f32
    %12 = vector.broadcast %cst_7 : f32 to vector<32x1xf32>
    %13 = arith.divf %11, %12 : vector<32x1xf32>
    %14 = vector.broadcast %6 : vector<32x1xf32> to vector<32x48xf32>
    %15 = arith.subf %0, %14 : vector<32x48xf32>
    %cst_8 = arith.constant 9.99999974E-6 : f32
    %16 = vector.broadcast %cst_8 : f32 to vector<32x1xf32>
    %17 = arith.addf %13, %16 : vector<32x1xf32>
    %18 = math.rsqrt %17 : vector<32x1xf32>
    %19 = vector.broadcast %18 : vector<32x1xf32> to vector<32x48xf32>
    %20 = arith.mulf %15, %19 : vector<32x48xf32>
    %21 = vector.broadcast %1 : vector<1x48xf32> to vector<32x48xf32>
    %22 = arith.mulf %20, %21 : vector<32x48xf32>
    %23 = vector.broadcast %2 : vector<1x48xf32> to vector<32x48xf32>
    %24 = arith.addf %22, %23 : vector<32x48xf32>
    %25 = arith.truncf %24 : vector<32x48xf32> to vector<32x48xbf16>
    %c0_9 = arith.constant 0 : index
    %c0_10 = arith.constant 0 : index
    %26 = vector.load %arg4[%c0_9, %c0_10] : memref<48x32xbf16, #tpu.memory_space<vmem>>, vector<48x32xbf16>
    %cst_11 = arith.constant dense<0.000000e+00> : vector<32x32xf32>
    %27 = tpu.matmul %25, %26, %cst_11 {dimension_numbers = #tpu.dot_dimension_numbers<[1], [0], [0], [1], [0, 0, 1, 1], [], []>} : vector<32x48xbf16>, vector<48x32xbf16>, vector<32x32xf32> -> vector<32x32xf32>
    %c0_12 = arith.constant 0 : index
    %c0_13 = arith.constant 0 : index
    %28 = vector.load %arg5[%c0_12, %c0_13] : memref<1x32xf32, #tpu.memory_space<vmem>>, vector<1x32xf32>
    %29 = vector.broadcast %28 : vector<1x32xf32> to vector<32x32xf32>
    %30 = arith.addf %27, %29 : vector<32x32xf32>
    %c0_14 = arith.constant 0 : index
    %c0_15 = arith.constant 0 : index
    %31 = vector.load %arg6[%c0_14, %c0_15] : memref<1x32xf32, #tpu.memory_space<vmem>>, vector<1x32xf32>
    %c0_16 = arith.constant 0 : index
    %c0_17 = arith.constant 0 : index
    %32 = vector.load %arg7[%c0_16, %c0_17] : memref<1x32xf32, #tpu.memory_space<vmem>>, vector<1x32xf32>
    %cst_18 = arith.constant dense<0.000000e+00> : vector<32xf32>
    %33 = vector.multi_reduction <add>, %30, %cst_18 [1] : vector<32x32xf32> to vector<32xf32>
    %34 = vector.shape_cast %33 : vector<32xf32> to vector<32x1xf32>
    %cst_19 = arith.constant 3.200000e+01 : f32
    %35 = vector.broadcast %cst_19 : f32 to vector<32x1xf32>
    %36 = arith.divf %34, %35 : vector<32x1xf32>
    %37 = vector.broadcast %36 : vector<32x1xf32> to vector<32x32xf32>
    %38 = arith.subf %30, %37 : vector<32x32xf32>
    %39 = arith.mulf %38, %38 : vector<32x32xf32>
    %cst_20 = arith.constant dense<0.000000e+00> : vector<32xf32>
    %40 = vector.multi_reduction <add>, %39, %cst_20 [1] : vector<32x32xf32> to vector<32xf32>
    %41 = vector.shape_cast %40 : vector<32xf32> to vector<32x1xf32>
    %cst_21 = arith.constant 3.200000e+01 : f32
    %42 = vector.broadcast %cst_21 : f32 to vector<32x1xf32>
    %43 = arith.divf %41, %42 : vector<32x1xf32>
    %44 = vector.broadcast %36 : vector<32x1xf32> to vector<32x32xf32>
    %45 = arith.subf %30, %44 : vector<32x32xf32>
    %cst_22 = arith.constant 9.99999974E-6 : f32
    %46 = vector.broadcast %cst_22 : f32 to vector<32x1xf32>
    %47 = arith.addf %43, %46 : vector<32x1xf32>
    %48 = math.rsqrt %47 : vector<32x1xf32>
    %49 = vector.broadcast %48 : vector<32x1xf32> to vector<32x32xf32>
    %50 = arith.mulf %45, %49 : vector<32x32xf32>
    %51 = vector.broadcast %31 : vector<1x32xf32> to vector<32x32xf32>
    %52 = arith.mulf %50, %51 : vector<32x32xf32>
    %53 = vector.broadcast %32 : vector<1x32xf32> to vector<32x32xf32>
    %54 = arith.addf %52, %53 : vector<32x32xf32>
    %c0_23 = arith.constant 0 : index
    %c0_24 = arith.constant 0 : index
    %55 = vector.load %arg8[%c0_23, %c0_24] : memref<32x32xf32, #tpu.memory_space<vmem>>, vector<32x32xf32>
    tpu.vector_store %arg8[%c0_23, %c0_24], %54 {strides = array<i32>} : memref<32x32xf32, #tpu.memory_space<vmem>>, vector<32x32xf32>,
    return
  }
  func.func @transform_0(%arg0: i32) -> (i32, i32) {
    %c0_i32 = arith.constant 0 : i32
    %c0_i32_0 = arith.constant 0 : i32
    return %arg0, %c0_i32 : i32, i32
  }
  func.func @transform_1(%arg0: i32) -> (i32, i32) {
    %c0_i32 = arith.constant 0 : i32
    %c0_i32_0 = arith.constant 0 : i32
    %c0_i32_1 = arith.constant 0 : i32
    return %c0_i32, %c0_i32_0 : i32, i32
  }
  func.func @transform_2(%arg0: i32) -> (i32, i32) {
    %c0_i32 = arith.constant 0 : i32
    %c0_i32_0 = arith.constant 0 : i32
    %c0_i32_1 = arith.constant 0 : i32
    return %c0_i32, %c0_i32_0 : i32, i32
  }
  func.func @transform_3(%arg0: i32) -> (i32, i32) {
    %c0_i32 = arith.constant 0 : i32
    %c0_i32_0 = arith.constant 0 : i32
    %c0_i32_1 = arith.constant 0 : i32
    return %c0_i32, %c0_i32_0 : i32, i32
  }
  func.func @transform_4(%arg0: i32) -> (i32, i32) {
    %c0_i32 = arith.constant 0 : i32
    %c0_i32_0 = arith.constant 0 : i32
    %c0_i32_1 = arith.constant 0 : i32
    return %c0_i32, %c0_i32_0 : i32, i32
  }
  func.func @transform_5(%arg0: i32) -> (i32, i32) {
    %c0_i32 = arith.constant 0 : i32
    %c0_i32_0 = arith.constant 0 : i32
    %c0_i32_1 = arith.constant 0 : i32
    return %c0_i32, %c0_i32_0 : i32, i32
  }
  func.func @transform_6(%arg0: i32) -> (i32, i32) {
    %c0_i32 = arith.constant 0 : i32
    %c0_i32_0 = arith.constant 0 : i32
    %c0_i32_1 = arith.constant 0 : i32
    return %c0_i32, %c0_i32_0 : i32, i32
  }
  func.func @transform_7(%arg0: i32) -> (i32, i32) {
    %c0_i32 = arith.constant 0 : i32
    %c0_i32_0 = arith.constant 0 : i32
    return %arg0, %c0_i32 : i32, i32
  }
}

</mosaic_0001>

<bundles_post_ra>
// kernel: tpu_custom_call.1
= control target key start
LH: loop header
LB: loop body
LE: loop exit
PB: predicated region body
PF: predicated region fallthrough
CT: control target
= control target key end

     0   :  { %vm34_vm0 = vcmask 392192   ;;  %s465_s0 = inlined_call_operand.vmem [shape: f32[32,48], index: 0, kind: input, shape index: {}]   ;;  %s466_s1 = inlined_call_operand.vmem [shape: f32[1,48], index: 1, kind: input, shape index: {}]   ;;  %s467_s2 = inlined_call_operand.vmem [shape: f32[1,48], index: 2, kind: input, shape index: {}]   ;;  %s468_s3 = inlined_call_operand.vmem [shape: bf16[48,32], index: 3, kind: input, shape index: {}]   ;;  %s469_s4 = inlined_call_operand.vmem [shape: f32[1,32], index: 4, kind: input, shape index: {}]   ;;  %s470_s5 = inlined_call_operand.vmem [shape: f32[1,32], index: 5, kind: input, shape index: {}]   ;;  %s471_s6 = inlined_call_operand.vmem [shape: f32[1,32], index: 6, kind: input, shape index: {}]   ;;  %s472_s7 = inlined_call_operand.hbm [shape: f32[32,32], index: 7, kind: output, shape index: {}]  }
   0x1   :  { %v28_v0 = vld [vmem:[%s465_s0] sm:$0xff]  ;;  %v30_v1 = vld [vmem:[%s465_s0 + $0x10] sm:$0xff]  ;;  %v29_v2 = vld [vmem:[%s465_s0 + $0x8] sm:$0xff] }
   0x2   :  { %v35_v3 = vsel %vm34_vm0, %v28_v0, 0.0  ;;  %v41_v4 = vsel %vm34_vm0, %v30_v1, 0.0  ;;  %v31_v5 = vld [vmem:[%s465_s0 + $0x18] sm:$0xff]  ;;  %v38_v6 = vsel %vm34_vm0, %v29_v2, 0.0 }
   0x3   :  { %36 = vadd.xlane.f32.xlu0 %v35_v3  ;;  %42 = vadd.xlane.f32.xlu1 %v41_v4  ;;  %v44_v7 = vsel %vm34_vm0, %v31_v5, 0.0 }
   0x4   :  { %12 = vsyncpa [#allocation3], 0  ;;  %v320_v28 = vld [vmem:[%s468_s3 + $0x10] sm:$0xff]   ;;  %v321_v29 = vld [vmem:[%s468_s3 + $0x8] sm:$0xff]   ;;  %vm198_vm1 = vcmask 261120  }
   0x5   :  { %307 = vmatprep.subr.bf16.mxu0 %v320_v28  ;;  %v322_v30 = vld [vmem:[%s468_s3] sm:$0xff]  }
   0x6   :  { %308 = vmatpush3.bf16.msra.mxu0 %v320_v28  ;;  %v292_v45 = vld [vmem:[%s466_s1] ss:$0 sm:$0xff] }
   0x7   :  { %39 = vadd.xlane.f32.xlu0 %v38_v6  ;;  %45 = vadd.xlane.f32.xlu1 %v44_v7  ;;  %v293_v50 = vld [vmem:[%s467_s2] ss:$0 sm:$0xff] }
   0x8   :  { %309 = vmatprep.subr.bf16.mxu0 %v321_v29 }
   0xa   :  { %310 = vmatpush3.bf16.msra.mxu0 %v321_v29 }
   0xb   :  { %311 = vmatprep.subr.bf16.mxu0 %v322_v30 }
   0xe   :  { %312 = vmatpush3.bf16.msra.mxu0 %v322_v30 }
  0x8c   :  { %v37_v8 = vpop.xlane.xlu0 %36  ;;  %v43_v9 = vpop.xlane.xlu1 %42 }
  0x8d   :  { %v48_v10 = vmul.f32 0.020833334, %v37_v8  ;;  %v50_v11 = vmul.f32 0.020833334, %v43_v9 }
  0x8f   :  { %v52_v12 = vsub.f32 %v28_v0, %v48_v10  ;;  %v54_v13 = vsub.f32 %v30_v1, %v50_v11  ;;  %v294_v0 = vld [vmem:[%s469_s4] ss:$0 sm:$0xff] }
  0x90   :  { %v40_v14 = vpop.xlane.xlu0 %39  ;;  %v46_v15 = vpop.xlane.xlu1 %45 }
  0x91   :  { %v49_v16 = vmul.f32 0.020833334, %v40_v14  ;;  %v51_v17 = vmul.f32 0.020833334, %v46_v15  ;;  %v56_v18 = vmul.f32 %v52_v12, %v52_v12  ;;  %v58_v19 = vmul.f32 %v54_v13, %v54_v13 }
  0x93   :  { %v53_v20 = vsub.f32 %v29_v2, %v49_v16  ;;  %v55_v21 = vsub.f32 %v31_v5, %v51_v17  ;;  %v60_v22 = vsel %vm34_vm0, %v56_v18, 0.0  ;;  %v66_v23 = vsel %vm34_vm0, %v58_v19, 0.0 }
  0x94   :  { %61 = vadd.xlane.f32.xlu0 %v60_v22 }
  0x95   :  { %v57_v24 = vmul.f32 %v53_v20, %v53_v20  ;;  %v59_v25 = vmul.f32 %v55_v21, %v55_v21 }
  0x97   :  { %v63_v26 = vsel %vm34_vm0, %v57_v24, 0.0  ;;  %v69_v27 = vsel %vm34_vm0, %v59_v25, 0.0 }
  0x98   :  { %67 = vadd.xlane.f32.xlu0 %v66_v23  ;;  %64 = vadd.xlane.f32.xlu1 %v63_v26 }
  0x9c   :  { %70 = vadd.xlane.f32.xlu1 %v69_v27 }
 0x11d   :  { %v62_v31 = vpop.xlane.xlu0 %61 }
 0x11e   :  { %v72_v32 = vmul.f32 0.020833334, %v62_v31 }
 0x120   :  { %v76_v33 = vadd.f32 1e-05, %v72_v32 }
 0x121   :  { %v65_v34 = vpop.xlane.xlu1 %64  ;;  %v68_v35 = vpop.xlane.xlu0 %67 }
 0x122   :  { %323 = vrsqrt.f32 %v76_v33  ;;  %v73_v36 = vmul.f32 0.020833334, %v65_v34  ;;  %v74_v37 = vmul.f32 0.020833334, %v68_v35 }
 0x124   :  { %v77_v38 = vadd.f32 1e-05, %v73_v36  ;;  %v78_v39 = vadd.f32 1e-05, %v74_v37 }
 0x125   :  { %v71_v40 = vpop.xlane.xlu1 %70 }
 0x126   :  { %325 = vrsqrt.f32 %v77_v38  ;;  %v75_v41 = vmul.f32 0.020833334, %v71_v40 }
 0x127   :  { %327 = vrsqrt.f32 %v78_v39 }
 0x128   :  { %v79_v42 = vadd.f32 1e-05, %v75_v41 }
 0x12a   :  { %329 = vrsqrt.f32 %v79_v42 }
 0x12f   :  { %v324_v43 = vpop.eup %323 }
 0x130   :  { %v84_v44 = vmul.f32 %v324_v43, %v52_v12 }
 0x132   :  { %v94_v49 = vmul.f32 %v292_v45, %v84_v44 }
 0x133   :  { %v326_v46 = vpop.eup %325 }
 0x134   :  { %v328_v47 = vpop.eup %327  ;;  %v85_v48 = vmul.f32 %v326_v46, %v53_v20  ;;  %v104_v54 = vadd.f32 %v293_v50, %v94_v49 }
 0x135   :  { %v86_v51 = vmul.f32 %v328_v47, %v54_v13  ;;  %v301_v47 = vld [vmem:[%s471_s6] ss:$0 sm:$0xff] }
 0x136   :  { %v95_v52 = vmul.f32 %v292_v45, %v85_v48 }
 0x137   :  { %v330_v53 = vpop.eup %329  ;;  %v96_v57 = vmul.f32 %v292_v45, %v86_v51 }
 0x138   :  { %v105_v55 = vadd.f32 %v293_v50, %v95_v52  ;;  %v87_v56 = vmul.f32 %v330_v53, %v55_v21 }
 0x139   :  { %v106_v60 = vadd.f32 %v293_v50, %v96_v57 }
 0x13a   :  { %v108_v58 = vpack.c.bf16 %v105_v55, %v104_v54  ;;  %v97_v59 = vmul.f32 %v292_v45, %v87_v56  ;;  %v300_v45 = vld [vmem:[%s470_s5] ss:$0 sm:$0xff]  ;;  %s361_s5 = smov [#allocation2]  }
 0x13b   :  { %s281_s20 = sshll.u32 %s361_s5, 4  ;;  %s282_s20 = int_to_ptr.vmem [resolvable:$true] %s281_s20 }
 0x13c   :  { %313 = vmatprep.mubr.msk.bf16.mxu0 %vm34_vm0, %v108_v58  ;;  %v107_v61 = vadd.f32 %v293_v50, %v97_v59  ;;  %s339_s6 = scalar_lea.vmem %s282_s20, 512  ;;  %p344_p1 = scmp.lt.s32.totalorder %s282_s20, %s282_s20 }
 0x13d   :  { %p340_p0 = scmp.ne.s32.totalorder %s282_s20, %s339_s6  ;;  %p345_p2 = scmp.lt.s32.totalorder %s339_s6, %s339_s6 }
 0x13e   :  { %v109_v62 = vpack.c.bf16 %v107_v61, %v106_v60 }
 0x13f   :  { %p346_p3 = por %p345_p2, %p344_p1 }
 0x140   :  { %314 = vmatmul.mubr.msk.bf16.vlgmr.msra.gmra.mxu0 %vm34_vm0, %v109_v62 }
 0x141   :  { %p347_p4 = pnand %p346_p3, %p340_p0 }
 0x200   :  { %v315_v63 = vpop.f32.mrf.mxu0 }
 0x201   :  { %v190_v4 = vadd.f32 %v315_v63, %v294_v0 }
 0x202   :  { %v181_v1 = vpop.f32.mrf.mxu0 }
 0x203   :  { %v182_v2 = vadd.f32 %v294_v0, %v181_v1  ;;  %v205_v10 = vsel %vm198_vm1, %v190_v4, 0.0 }
 0x204   :  { %v316_v3 = vpop.f32.mrf.mxu0 }
 0x205   :  { %v199_v5 = vsel %vm198_vm1, %v182_v2, 0.0  ;;  %v193_v8 = vadd.f32 %v316_v3, %v294_v0 }
 0x206   :  { %v184_v6 = vpop.f32.mrf.mxu0  ;;  %200 = vadd.xlane.f32.xlu0 %v199_v5 }
 0x207   :  { %v185_v7 = vadd.f32 %v294_v0, %v184_v6  ;;  %v208_v11 = vsel %vm198_vm1, %v193_v8, 0.0 }
 0x209   :  { %v202_v9 = vsel %vm198_vm1, %v185_v7, 0.0 }
 0x20a   :  { %203 = vadd.xlane.f32.xlu1 %v202_v9  ;;  %206 = vadd.xlane.f32.xlu0 %v205_v10 }
 0x20e   :  { %209 = vadd.xlane.f32.xlu1 %v208_v11 }
 0x28f   :  { %v201_v12 = vpop.xlane.xlu0 %200 }
 0x290   :  { %v212_v13 = vmul.f32 0.03125, %v201_v12 }
 0x292   :  { %v216_v14 = vsub.f32 %v182_v2, %v212_v13 }
 0x293   :  { %v204_v15 = vpop.xlane.xlu1 %203  ;;  %v207_v16 = vpop.xlane.xlu0 %206 }
 0x294   :  { %v213_v17 = vmul.f32 0.03125, %v204_v15  ;;  %v214_v18 = vmul.f32 0.03125, %v207_v16  ;;  %v220_v19 = vmul.f32 %v216_v14, %v216_v14 }
 0x296   :  { %v217_v20 = vsub.f32 %v185_v7, %v213_v17  ;;  %v218_v21 = vsub.f32 %v190_v4, %v214_v18  ;;  %v224_v22 = vsel %vm198_vm1, %v220_v19, 0.0 }
 0x297   :  { %v210_v23 = vpop.xlane.xlu1 %209  ;;  %225 = vadd.xlane.f32.xlu0 %v224_v22 }
 0x298   :  { %v215_v24 = vmul.f32 0.03125, %v210_v23  ;;  %v221_v25 = vmul.f32 %v217_v20, %v217_v20  ;;  %v222_v26 = vmul.f32 %v218_v21, %v218_v21 }
 0x29a   :  { %v219_v27 = vsub.f32 %v193_v8, %v215_v24  ;;  %v227_v28 = vsel %vm198_vm1, %v221_v25, 0.0  ;;  %v230_v29 = vsel %vm198_vm1, %v222_v26, 0.0 }
 0x29b   :  { %228 = vadd.xlane.f32.xlu1 %v227_v28  ;;  %231 = vadd.xlane.f32.xlu0 %v230_v29 }
 0x29c   :  { %v223_v30 = vmul.f32 %v219_v27, %v219_v27 }
 0x29e   :  { %v233_v31 = vsel %vm198_vm1, %v223_v30, 0.0 }
 0x29f   :  { %234 = vadd.xlane.f32.xlu1 %v233_v31 }
 0x320   :  { %v226_v32 = vpop.xlane.xlu0 %225 }
 0x321   :  { %v236_v33 = vmul.f32 0.03125, %v226_v32 }
 0x323   :  { %v240_v34 = vadd.f32 1e-05, %v236_v33 }
 0x324   :  { %v229_v35 = vpop.xlane.xlu1 %228  ;;  %v232_v36 = vpop.xlane.xlu0 %231 }
 0x325   :  { %331 = vrsqrt.f32 %v240_v34  ;;  %v237_v37 = vmul.f32 0.03125, %v229_v35  ;;  %v238_v38 = vmul.f32 0.03125, %v232_v36 }
 0x327   :  { %v241_v39 = vadd.f32 1e-05, %v237_v37  ;;  %v242_v40 = vadd.f32 1e-05, %v238_v38 }
 0x328   :  { %v235_v41 = vpop.xlane.xlu1 %234 }
 0x329   :  { %333 = vrsqrt.f32 %v241_v39  ;;  %v239_v42 = vmul.f32 0.03125, %v235_v41 }
 0x32a   :  { %335 = vrsqrt.f32 %v242_v40 }
 0x32b   :  { %v243_v43 = vadd.f32 1e-05, %v239_v42 }
 0x32d   :  { %337 = vrsqrt.f32 %v243_v43 }
 0x332   :  { %v332_v44 = vpop.eup %331 }
 0x333   :  { %v248_v46 = vmul.f32 %v332_v44, %v216_v14 }
 0x335   :  { %v258_v48 = vmul.f32 %v300_v45, %v248_v46 }
 0x336   :  { %v334_v49 = vpop.eup %333 }
 0x337   :  { %v336_v50 = vpop.eup %335  ;;  %v249_v51 = vmul.f32 %v334_v49, %v217_v20  ;;  %v268_v52 = vadd.f32 %v301_v47, %v258_v48 }
 0x338   :  { %v250_v53 = vmul.f32 %v336_v50, %v218_v21 }
 0x339   :  { %v259_v54 = vmul.f32 %v300_v45, %v249_v51  ;;  %272 = vst.msk [vmem:[#allocation2] sm:$0xff] %vm198_vm1, %v268_v52 }
 0x33a   :  { %v338_v55 = vpop.eup %337  ;;  %v260_v56 = vmul.f32 %v300_v45, %v250_v53 }
 0x33b   :  { %v251_v57 = vmul.f32 %v338_v55, %v219_v27  ;;  %v269_v58 = vadd.f32 %v301_v47, %v259_v54 }
 0x33c   :  { %v270_v59 = vadd.f32 %v301_v47, %v260_v56 }
 0x33d   :  { %v261_v60 = vmul.f32 %v300_v45, %v251_v57  ;;  %273 = vst.msk [vmem:[#allocation2 + $0x8] sm:$0xff] %vm198_vm1, %v269_v58 }
 0x33e   :  { %274 = vst.msk [vmem:[#allocation2 + $0x10] sm:$0xff] %vm198_vm1, %v270_v59 }
 0x33f   :  { %v271_v61 = vadd.f32 %v301_v47, %v261_v60 }
 0x341   :  { %275 = vst.msk [vmem:[#allocation2 + $0x18] sm:$0xff] %vm198_vm1, %v271_v61 }
 0x342   :  { %350 = shalt.err (!%p347_p4)
}
 0x343   :  { %s362_s21 = smov 128   ;;  %s363_s22 = smov 8  }
 0x344   :  { %287 = dma.vmem_to_hbm [thread:$0]  %s282_s20, 512, %s472_s7, [#allocation3], %s362_s21, %s362_s21, %s363_s22  }
 0x345   :  { %359 = dma.done.wait [#allocation3], 512  }
 0x346   :  { %360 = vsyncadd [#allocation3], 4294966784 }
 0x347   :  { %291 = vsyncpa [#allocation3], 1 }

</bundles_post_ra>
